<compile_context>
chip_gen: v7x
topology: tpu7x:2x2x1
jax: 0.10.0
libtpu: 0.0.40
codegen_flags: <defaults>
</compile_context>

<pallas_src>
import jax
import jax.numpy as jnp
from jax.experimental import pallas as pl
from jax.experimental.pallas import tpu as pltpu

FEATURE_DIM = 512
ATTR_DIM = 46
ATTR_PAD = 128          # attr head padded to a full lane width (46 -> 128)
NUM_ID = 128
LEAKY_SLOPE = 0.01      # nn.LeakyReLU default


def _round_up(x, m):
    return (x + m - 1) // m * m


def _device_kind():
    try:
        return jax.devices()[0].device_kind.lower()
    except Exception:
        return ""


def _vmem_capacity_bytes():
    try:
        return int(pltpu.get_tpu_info().vmem_capacity_bytes)
    except Exception:
        return 64 * 1024 * 1024   # conservative fallback: v7x per-TensorCore VMEM


def _myosnet2_kernel(
    x_ref,        # (TB, C, THW)    bf16 streamed input tile
    wp_ref,       # (C, 512)        bf16 stand-in backbone projection (1/HW folded in)
    bp_ref,       # (1, 512)        f32
    wl_ref,       # (512, 512)      bf16 self.linear with eval-BN folded in
    bl_ref,       # (1, 512)        f32 bias with eval-BN folded in
    wa_ref,       # (512, 128)      bf16 attr_lin, cols padded 46 -> 128 with zeros
    ba_ref,       # (1, 128)        f32, padded with zeros
    wif_ref,      # (512, NIDp)     bf16 id_lin rows for the feature part
    wia_ref,      # (128, NIDp)     bf16 id_lin rows for the attr part (pad rows = 0)
    bi_ref,       # (1, NIDp)       f32
    out_id_ref,   # (TB, NIDp)      f32
    out_attr_ref, # (TB, 128)       f32 (sliced back to 46 in the wrapper)
    acc_ref,      # (TB, C)         f32 scratch: running spatial sum for GAP
):
    hw = pl.program_id(1)

    @pl.when(hw == 0)
    def _():
        acc_ref[...] = jnp.zeros_like(acc_ref)

    # --- global average pool: per-HW-tile partial sum, accumulated in f32 ---
    # TODO(synk): on v7x only, if the bundle profile shows the per-step cast +
    # XLU lane-reduce co-dominant with DMA, replace this with an MXU matvec
    # against a bf16 ones vector (MXU is idle during streaming).
    acc_ref[...] += jnp.sum(x_ref[...].astype(jnp.float32), axis=-1)

    @pl.when(hw == pl.num_programs(1) - 1)
    def _():
        pooled = acc_ref[...]                  # spatial SUM; 1/HW is folded into w_proj

        # stand-in backbone head: pooled @ (Wp / HW) + bp
        feats = jnp.dot(pooled.astype(jnp.bfloat16), wp_ref[...],
                        preferred_element_type=jnp.float32) + bp_ref[...]

        # dropout(0.3): identity in eval.  self.linear with eval-mode BN folded in.
        feats = jnp.dot(feats.astype(jnp.bfloat16), wl_ref[...],
                        preferred_element_type=jnp.float32) + bl_ref[...]

        # LeakyReLU (kept in f32 on the VPU)
        feats = jnp.where(feats > 0, feats, LEAKY_SLOPE * feats)
        fb = feats.astype(jnp.bfloat16)

        # attr_lin (lane-padded to 128 columns; padded columns are exactly 0)
        out_attr = jnp.dot(fb, wa_ref[...],
                           preferred_element_type=jnp.float32) + ba_ref[...]

        # id_lin on cat([features, out_attr], dim=1): split weight -> two matmuls
        out_id = (jnp.dot(fb, wif_ref[...], preferred_element_type=jnp.float32)
                  + jnp.dot(out_attr.astype(jnp.bfloat16), wia_ref[...],
                            preferred_element_type=jnp.float32)
                  + bi_ref[...])

        out_attr_ref[...] = out_attr.astype(out_attr_ref.dtype)
        out_id_ref[...] = out_id.astype(out_id_ref.dtype)


def myosnet2_forward(x_nchw, params):
    """x_nchw: (B, C, H, W) float32.  Returns (out_id, out_attr)."""
    B, C, H, W = x_nchw.shape
    HW = H * W
    num_id = params["b_id"].shape[-1]
    num_id_pad = _round_up(num_id, 128)
    # TODO(synk): once num_id_pad * FEATURE_DIM bf16 exceeds ~4-8 MiB, stream
    # w_id_feat / w_id_attr / b_id in (512, tile_n) blocks (inner pltpu.emit_pipeline
    # in the finalize branch) instead of keeping the full block resident.

    # ---- fuse eval-mode BatchNorm1d into self.linear (plain-JAX glue) ----
    eps = 1e-5
    scale = params["bn_gamma"] / jnp.sqrt(params["bn_var"] + eps)        # (512,)
    shift = params["bn_beta"] - params["bn_mean"] * scale
    w_lin = params["w_lin"] * scale[None, :]
    b_lin = params["b_lin"] * scale[None, :] + shift[None, :]

    # ---- fold the GAP's 1/HW into the backbone projection weight (free) ----
    w_proj = params["w_proj"] * (1.0 / float(HW))

    # ---- lane-pad the 46-wide attr head (and matching id_lin rows) to 128 ----
    w_attr = jnp.zeros((FEATURE_DIM, ATTR_PAD), jnp.float32).at[:, :ATTR_DIM].set(params["w_attr"])
    b_attr = jnp.zeros((1, ATTR_PAD), jnp.float32).at[:, :ATTR_DIM].set(params["b_attr"])
    w_id_feat = jnp.zeros((FEATURE_DIM, num_id_pad), jnp.float32).at[:, :num_id].set(params["w_id_feat"])
    w_id_attr = jnp.zeros((ATTR_PAD, num_id_pad), jnp.float32).at[:ATTR_DIM, :num_id].set(params["w_id_attr"])
    b_id = jnp.zeros((1, num_id_pad), jnp.float32).at[:, :num_id].set(params["b_id"])

    kind = _device_kind()

    # ---- batch tile: fill the 256-deep MXU on v6e/v7x when B is large enough ----
    if B >= 256 and "v5" not in kind:
        tile_b = 256
    else:
        tile_b = min(_round_up(B, 8), 128)
    B_pad = _round_up(B, tile_b)

    # ---- per-generation VMEM budget drives the spatial tile ----
    vmem_cap = _vmem_capacity_bytes()
    vmem_cap_limit = (vmem_cap * 3) // 4          # ~96 MiB on v5e/v6e, ~48 MiB on v7x

    # Fixed (non-x) VMEM cost with single-buffered weights/biases and resident outputs.
    weight_bytes = 2 * (C * FEATURE_DIM + FEATURE_DIM * FEATURE_DIM
                        + FEATURE_DIM * ATTR_PAD
                        + FEATURE_DIM * num_id_pad + ATTR_PAD * num_id_pad)   # bf16, 1 buf
    bias_bytes = 4 * (2 * FEATURE_DIM + ATTR_PAD + num_id_pad)                # f32, 1 buf
    out_bytes = 4 * tile_b * (num_id_pad + ATTR_PAD)                          # resident per batch tile
    scratch_bytes = 4 * tile_b * C
    fixed_bytes = weight_bytes + bias_bytes + out_bytes + scratch_bytes

    x_budget = max(vmem_cap_limit - fixed_bytes - 4 * 1024 * 1024, 2 * 1024 * 1024)
    max_hw = x_budget // (2 * tile_b * C * 2)     # double-buffered bf16 x tile
    tile_hw = min(_round_up(HW, 128), max(128, (max_hw // 128) * 128))
    HW_pad = _round_up(HW, tile_hw)

    # ---- stream x as bf16 (halves HBM bytes for the bandwidth-bound GAP pass) ----
    x = x_nchw.reshape(B, C, HW).astype(jnp.bfloat16)
    x = jnp.pad(x, ((0, B_pad - B), (0, 0), (0, HW_pad - HW)))

    bf = jnp.bfloat16
    inputs = (
        x,
        w_proj.astype(bf), params["b_proj"],
        w_lin.astype(bf), b_lin,
        w_attr.astype(bf), b_attr,
        w_id_feat.astype(bf), w_id_attr.astype(bf), b_id,
    )

    grid = (B_pad // tile_b, HW_pad // tile_hw)

    def _const_spec(shape):
        # Constant-index weights/biases are never revisited: single-buffer them.
        return pl.BlockSpec(shape, lambda b, h: (0, 0), pipeline_mode=pl.Buffered(1))

    in_specs = [
        pl.BlockSpec((tile_b, C, tile_hw), lambda b, h: (b, 0, h)),   # x (streamed)
        _const_spec((C, FEATURE_DIM)),                                # w_proj (1/HW folded)
        _const_spec((1, FEATURE_DIM)),                                # b_proj
        _const_spec((FEATURE_DIM, FEATURE_DIM)),                      # w_lin (BN folded)
        _const_spec((1, FEATURE_DIM)),                                # b_lin (BN folded)
        _const_spec((FEATURE_DIM, ATTR_PAD)),                         # w_attr (padded)
        _const_spec((1, ATTR_PAD)),                                   # b_attr (padded)
        _const_spec((FEATURE_DIM, num_id_pad)),                       # w_id_feat
        _const_spec((ATTR_PAD, num_id_pad)),                          # w_id_attr (padded)
        _const_spec((1, num_id_pad)),                                 # b_id
    ]
    out_specs = (
        pl.BlockSpec((tile_b, num_id_pad), lambda b, h: (b, 0)),
        pl.BlockSpec((tile_b, ATTR_PAD), lambda b, h: (b, 0)),
    )

    # Tight VMEM estimate: single-buffered weights/biases + double-buffered x tile
    # + resident outputs/scratch, plus headroom for compiler-internal scratch.
    est = fixed_bytes + 2 * tile_b * C * tile_hw * 2
    vmem_limit = int(min(vmem_cap_limit, max(est + 8 * 1024 * 1024, 16 * 1024 * 1024)))

    # On v7x split batch tiles across the two TensorCores (per-core VMEM sizing holds).
    core_parallel = getattr(pltpu, "CORE_PARALLEL", None)
    if ("v7" in kind) and core_parallel is not None and grid[0] >= 2 and grid[0] % 2 == 0:
        dim_sems = (core_parallel, getattr(pltpu, "ARBITRARY", "arbitrary"))
    else:
        dim_sems = ("parallel", "arbitrary")

    out_id_pad, out_attr_pad = pl.pallas_call(
        _myosnet2_kernel,
        out_shape=(
            jax.ShapeDtypeStruct((B_pad, num_id_pad), jnp.float32),
            jax.ShapeDtypeStruct((B_pad, ATTR_PAD), jnp.float32),
        ),
        grid_spec=pltpu.PrefetchScalarGridSpec(
            num_scalar_prefetch=0,
            grid=grid,
            in_specs=in_specs,
            out_specs=out_specs,
            scratch_shapes=[pltpu.VMEM((tile_b, C), jnp.float32)],
        ),
        compiler_params=pltpu.CompilerParams(
            dimension_semantics=dim_sems,
            vmem_limit_bytes=vmem_limit,
        ),
    )(*inputs)

    return out_id_pad[:B, :num_id], out_attr_pad[:B, :ATTR_DIM]


def init_params(key, in_channels):
    """Deterministic synthetic parameter init matching the module's shapes."""
    ks = jax.random.split(key, 12)

    def lin(k, fan_in, fan_out):
        kw, kb = jax.random.split(k)
        bound = 1.0 / jnp.sqrt(fan_in)
        w = jax.random.uniform(kw, (fan_in, fan_out), jnp.float32, -bound, bound)
        b = jax.random.uniform(kb, (1, fan_out), jnp.float32, -bound, bound)
        return w, b

    w_proj, b_proj = lin(ks[0], in_channels, FEATURE_DIM)        # stand-in backbone head
    w_lin, b_lin = lin(ks[1], FEATURE_DIM, FEATURE_DIM)          # self.linear
    w_attr, b_attr = lin(ks[2], FEATURE_DIM, ATTR_DIM)           # self.attr_lin
    w_id_full, b_id = lin(ks[3], FEATURE_DIM + ATTR_DIM, NUM_ID) # self.id_lin (558 -> num_id)

    params = dict(
        w_proj=w_proj, b_proj=b_proj,
        w_lin=w_lin, b_lin=b_lin,
        w_attr=w_attr, b_attr=b_attr,
        w_id_feat=w_id_full[:FEATURE_DIM, :],
        w_id_attr=w_id_full[FEATURE_DIM:, :],
        b_id=b_id,
        bn_gamma=jax.random.uniform(ks[4], (FEATURE_DIM,), jnp.float32, 0.5, 1.5),
        bn_beta=jax.random.uniform(ks[5], (FEATURE_DIM,), jnp.float32, -0.1, 0.1),
        bn_mean=jax.random.uniform(ks[6], (FEATURE_DIM,), jnp.float32, -0.1, 0.1),
        bn_var=jax.random.uniform(ks[7], (FEATURE_DIM,), jnp.float32, 0.5, 1.5),
    )
    return params
    # TODO(synk): the real OSNet backbone (self.model) is an external module;
    # it is replaced here by a deterministic GAP + Linear stand-in producing
    # the (B, 512) feature vector the head expects.


if __name__ == "__main__":
    key = jax.random.PRNGKey(0)
    kx, kp = jax.random.split(key)

    B, C, H, W = 2, 4, 16, 16
    x = jax.random.normal(kx, (B, C, H, W), jnp.float32)

    params = init_params(kp, in_channels=C)

    out_id, out_attr = jax.jit(lambda xx: myosnet2_forward(xx, params))(x)
    jax.block_until_ready((out_id, out_attr))

    assert out_id.shape == (B, NUM_ID)
    assert out_attr.shape == (B, ATTR_DIM)
    print("KERNEL_OK")
</pallas_src>

<mosaic_0001>
module attributes {stable_mosaic.version = 11 : i64} {
  func.func @_myosnet2_kernel(%arg0: i32, %arg1: i32, %arg2: memref<8x4x256xbf16, #tpu.memory_space<vmem>>, %arg3: memref<4x512xbf16, #tpu.memory_space<vmem>>, %arg4: memref<1x512xf32, #tpu.memory_space<vmem>>, %arg5: memref<512x512xbf16, #tpu.memory_space<vmem>>, %arg6: memref<1x512xf32, #tpu.memory_space<vmem>>, %arg7: memref<512x128xbf16, #tpu.memory_space<vmem>>, %arg8: memref<1x128xf32, #tpu.memory_space<vmem>>, %arg9: memref<512x128xbf16, #tpu.memory_space<vmem>>, %arg10: memref<128x128xbf16, #tpu.memory_space<vmem>>, %arg11: memref<1x128xf32, #tpu.memory_space<vmem>>, %arg12: memref<8x128xf32, #tpu.memory_space<vmem>>, %arg13: memref<8x128xf32, #tpu.memory_space<vmem>>, %arg14: memref<8x4xf32, #tpu.memory_space<vmem>>) attributes {dimension_semantics = [#tpu.dimension_semantics<parallel>, #tpu.dimension_semantics<arbitrary>], iteration_bounds = array<i64: 1, 1>, scalar_prefetch = 0 : i64, scratch_operands = 1 : i64, tpu.core_type = #tpu.core_type<tc>, window_params = [{transform_indices = @transform_0, window_bounds = array<i64: 8, 4, 256>}, {pipeline_mode = #tpu.pipeline_mode<synchronous>, transform_indices = @transform_1, window_bounds = array<i64: 4, 512>}, {pipeline_mode = #tpu.pipeline_mode<synchronous>, transform_indices = @transform_2, window_bounds = array<i64: 1, 512>}, {pipeline_mode = #tpu.pipeline_mode<synchronous>, transform_indices = @transform_3, window_bounds = array<i64: 512, 512>}, {pipeline_mode = #tpu.pipeline_mode<synchronous>, transform_indices = @transform_4, window_bounds = array<i64: 1, 512>}, {pipeline_mode = #tpu.pipeline_mode<synchronous>, transform_indices = @transform_5, window_bounds = array<i64: 512, 128>}, {pipeline_mode = #tpu.pipeline_mode<synchronous>, transform_indices = @transform_6, window_bounds = array<i64: 1, 128>}, {pipeline_mode = #tpu.pipeline_mode<synchronous>, transform_indices = @transform_7, window_bounds = array<i64: 512, 128>}, {pipeline_mode = #tpu.pipeline_mode<synchronous>, transform_indices = @transform_8, window_bounds = array<i64: 128, 128>}, {pipeline_mode = #tpu.pipeline_mode<synchronous>, transform_indices = @transform_9, window_bounds = array<i64: 1, 128>}, {transform_indices = @transform_10, window_bounds = array<i64: 8, 128>}, {transform_indices = @transform_11, window_bounds = array<i64: 8, 128>}]} {
    %c0_i32 = arith.constant 0 : i32
    %0 = arith.cmpi eq, %arg1, %c0_i32 : i32
    %1 = arith.extui %0 : i1 to i32
    %c0_i32_0 = arith.constant 0 : i32
    %2 = arith.cmpi ne, %1, %c0_i32_0 : i32
    scf.if %2 {
      %cst_9 = arith.constant 0.000000e+00 : f32
      %12 = vector.broadcast %cst_9 : f32 to vector<8x4xf32>
      %c0_10 = arith.constant 0 : index
      %c0_11 = arith.constant 0 : index
      %13 = vector.load %arg14[%c0_10, %c0_11] : memref<8x4xf32, #tpu.memory_space<vmem>>, vector<8x4xf32>
      tpu.vector_store %arg14[%c0_10, %c0_11], %12 {strides = array<i32>} : memref<8x4xf32, #tpu.memory_space<vmem>>, vector<8x4xf32>,
    } else {
    }
    %c0 = arith.constant 0 : index
    %c0_1 = arith.constant 0 : index
    %3 = vector.load %arg14[%c0, %c0_1] : memref<8x4xf32, #tpu.memory_space<vmem>>, vector<8x4xf32>
    %c0_2 = arith.constant 0 : index
    %c0_3 = arith.constant 0 : index
    %c0_4 = arith.constant 0 : index
    %4 = vector.load %arg2[%c0_2, %c0_3, %c0_4] : memref<8x4x256xbf16, #tpu.memory_space<vmem>>, vector<8x4x256xbf16>
    %5 = arith.extf %4 : vector<8x4x256xbf16> to vector<8x4x256xf32>
    %cst = arith.constant dense<0.000000e+00> : vector<8x4xf32>
    %6 = vector.multi_reduction <add>, %5, %cst [2] : vector<8x4x256xf32> to vector<8x4xf32>
    %7 = arith.addf %3, %6 : vector<8x4xf32>
    %c0_5 = arith.constant 0 : index
    %c0_6 = arith.constant 0 : index
    %8 = vector.load %arg14[%c0_5, %c0_6] : memref<8x4xf32, #tpu.memory_space<vmem>>, vector<8x4xf32>
    tpu.vector_store %arg14[%c0_5, %c0_6], %7 {strides = array<i32>} : memref<8x4xf32, #tpu.memory_space<vmem>>, vector<8x4xf32>,
    %c0_i32_7 = arith.constant 0 : i32
    %9 = arith.cmpi eq, %arg1, %c0_i32_7 : i32
    %10 = arith.extui %9 : i1 to i32
    %c0_i32_8 = arith.constant 0 : i32
    %11 = arith.cmpi ne, %10, %c0_i32_8 : i32
    scf.if %11 {
      %c0_9 = arith.constant 0 : index
      %c0_10 = arith.constant 0 : index
      %12 = vector.load %arg14[%c0_9, %c0_10] : memref<8x4xf32, #tpu.memory_space<vmem>>, vector<8x4xf32>
      %13 = arith.truncf %12 : vector<8x4xf32> to vector<8x4xbf16>
      %c0_11 = arith.constant 0 : index
      %c0_12 = arith.constant 0 : index
      %14 = vector.load %arg3[%c0_11, %c0_12] : memref<4x512xbf16, #tpu.memory_space<vmem>>, vector<4x512xbf16>
      %cst_13 = arith.constant dense<0.000000e+00> : vector<8x512xf32>
      %15 = tpu.matmul %13, %14, %cst_13 {dimension_numbers = #tpu.dot_dimension_numbers<[1], [0], [0], [1], [0, 0, 1, 1], [], []>} : vector<8x4xbf16>, vector<4x512xbf16>, vector<8x512xf32> -> vector<8x512xf32>
      %c0_14 = arith.constant 0 : index
      %c0_15 = arith.constant 0 : index
      %16 = vector.load %arg4[%c0_14, %c0_15] : memref<1x512xf32, #tpu.memory_space<vmem>>, vector<1x512xf32>
      %17 = vector.broadcast %16 : vector<1x512xf32> to vector<8x512xf32>
      %18 = arith.addf %15, %17 : vector<8x512xf32>
      %19 = arith.truncf %18 : vector<8x512xf32> to vector<8x512xbf16>
      %c0_16 = arith.constant 0 : index
      %c0_17 = arith.constant 0 : index
      %20 = vector.load %arg5[%c0_16, %c0_17] : memref<512x512xbf16, #tpu.memory_space<vmem>>, vector<512x512xbf16>
      %cst_18 = arith.constant dense<0.000000e+00> : vector<8x512xf32>
      %21 = tpu.matmul %19, %20, %cst_18 {dimension_numbers = #tpu.dot_dimension_numbers<[1], [0], [0], [1], [0, 0, 1, 1], [], []>} : vector<8x512xbf16>, vector<512x512xbf16>, vector<8x512xf32> -> vector<8x512xf32>
      %c0_19 = arith.constant 0 : index
      %c0_20 = arith.constant 0 : index
      %22 = vector.load %arg6[%c0_19, %c0_20] : memref<1x512xf32, #tpu.memory_space<vmem>>, vector<1x512xf32>
      %23 = vector.broadcast %22 : vector<1x512xf32> to vector<8x512xf32>
      %24 = arith.addf %21, %23 : vector<8x512xf32>
      %cst_21 = arith.constant 0.000000e+00 : f32
      %25 = vector.broadcast %cst_21 : f32 to vector<8x512xf32>
      %26 = arith.cmpf ogt, %24, %25 : vector<8x512xf32>
      %cst_22 = arith.constant 0.00999999977 : f32
      %27 = vector.broadcast %cst_22 : f32 to vector<8x512xf32>
      %28 = arith.mulf %27, %24 : vector<8x512xf32>
      %29 = arith.select %26, %24, %28 : vector<8x512xi1>, vector<8x512xf32>
      %30 = arith.truncf %29 : vector<8x512xf32> to vector<8x512xbf16>
      %c0_23 = arith.constant 0 : index
      %c0_24 = arith.constant 0 : index
      %31 = vector.load %arg7[%c0_23, %c0_24] : memref<512x128xbf16, #tpu.memory_space<vmem>>, vector<512x128xbf16>
      %cst_25 = arith.constant dense<0.000000e+00> : vector<8x128xf32>
      %32 = tpu.matmul %30, %31, %cst_25 {dimension_numbers = #tpu.dot_dimension_numbers<[1], [0], [0], [1], [0, 0, 1, 1], [], []>} : vector<8x512xbf16>, vector<512x128xbf16>, vector<8x128xf32> -> vector<8x128xf32>
      %c0_26 = arith.constant 0 : index
      %c0_27 = arith.constant 0 : index
      %33 = vector.load %arg8[%c0_26, %c0_27] : memref<1x128xf32, #tpu.memory_space<vmem>>, vector<1x128xf32>
      %34 = vector.broadcast %33 : vector<1x128xf32> to vector<8x128xf32>
      %35 = arith.addf %32, %34 : vector<8x128xf32>
      %c0_28 = arith.constant 0 : index
      %c0_29 = arith.constant 0 : index
      %36 = vector.load %arg9[%c0_28, %c0_29] : memref<512x128xbf16, #tpu.memory_space<vmem>>, vector<512x128xbf16>
      %cst_30 = arith.constant dense<0.000000e+00> : vector<8x128xf32>
      %37 = tpu.matmul %30, %36, %cst_30 {dimension_numbers = #tpu.dot_dimension_numbers<[1], [0], [0], [1], [0, 0, 1, 1], [], []>} : vector<8x512xbf16>, vector<512x128xbf16>, vector<8x128xf32> -> vector<8x128xf32>
      %38 = arith.truncf %35 : vector<8x128xf32> to vector<8x128xbf16>
      %c0_31 = arith.constant 0 : index
      %c0_32 = arith.constant 0 : index
      %39 = vector.load %arg10[%c0_31, %c0_32] : memref<128x128xbf16, #tpu.memory_space<vmem>>, vector<128x128xbf16>
      %cst_33 = arith.constant dense<0.000000e+00> : vector<8x128xf32>
      %40 = tpu.matmul %38, %39, %cst_33 {dimension_numbers = #tpu.dot_dimension_numbers<[1], [0], [0], [1], [0, 0, 1, 1], [], []>} : vector<8x128xbf16>, vector<128x128xbf16>, vector<8x128xf32> -> vector<8x128xf32>
      %41 = arith.addf %37, %40 : vector<8x128xf32>
      %c0_34 = arith.constant 0 : index
      %c0_35 = arith.constant 0 : index
      %42 = vector.load %arg11[%c0_34, %c0_35] : memref<1x128xf32, #tpu.memory_space<vmem>>, vector<1x128xf32>
      %43 = vector.broadcast %42 : vector<1x128xf32> to vector<8x128xf32>
      %44 = arith.addf %41, %43 : vector<8x128xf32>
      %c0_36 = arith.constant 0 : index
      %c0_37 = arith.constant 0 : index
      %45 = vector.load %arg13[%c0_36, %c0_37] : memref<8x128xf32, #tpu.memory_space<vmem>>, vector<8x128xf32>
      tpu.vector_store %arg13[%c0_36, %c0_37], %35 {strides = array<i32>} : memref<8x128xf32, #tpu.memory_space<vmem>>, vector<8x128xf32>,
      %c0_38 = arith.constant 0 : index
      %c0_39 = arith.constant 0 : index
      %46 = vector.load %arg12[%c0_38, %c0_39] : memref<8x128xf32, #tpu.memory_space<vmem>>, vector<8x128xf32>
      tpu.vector_store %arg12[%c0_38, %c0_39], %44 {strides = array<i32>} : memref<8x128xf32, #tpu.memory_space<vmem>>, vector<8x128xf32>,
    } else {
    }
    return
  }
  func.func @transform_0(%arg0: i32, %arg1: i32) -> (i32, i32, i32) {
    %c0_i32 = arith.constant 0 : i32
    %c0_i32_0 = arith.constant 0 : i32
    return %arg0, %c0_i32, %arg1 : i32, i32, i32
  }
  func.func @transform_1(%arg0: i32, %arg1: i32) -> (i32, i32) {
    %c0_i32 = arith.constant 0 : i32
    %c0_i32_0 = arith.constant 0 : i32
    %c0_i32_1 = arith.constant 0 : i32
    return %c0_i32, %c0_i32_0 : i32, i32
  }
  func.func @transform_2(%arg0: i32, %arg1: i32) -> (i32, i32) {
    %c0_i32 = arith.constant 0 : i32
    %c0_i32_0 = arith.constant 0 : i32
    %c0_i32_1 = arith.constant 0 : i32
    return %c0_i32, %c0_i32_0 : i32, i32
  }
  func.func @transform_3(%arg0: i32, %arg1: i32) -> (i32, i32) {
    %c0_i32 = arith.constant 0 : i32
    %c0_i32_0 = arith.constant 0 : i32
    %c0_i32_1 = arith.constant 0 : i32
    return %c0_i32, %c0_i32_0 : i32, i32
  }
  func.func @transform_4(%arg0: i32, %arg1: i32) -> (i32, i32) {
    %c0_i32 = arith.constant 0 : i32
    %c0_i32_0 = arith.constant 0 : i32
    %c0_i32_1 = arith.constant 0 : i32
    return %c0_i32, %c0_i32_0 : i32, i32
  }
  func.func @transform_5(%arg0: i32, %arg1: i32) -> (i32, i32) {
    %c0_i32 = arith.constant 0 : i32
    %c0_i32_0 = arith.constant 0 : i32
    %c0_i32_1 = arith.constant 0 : i32
    return %c0_i32, %c0_i32_0 : i32, i32
  }
  func.func @transform_6(%arg0: i32, %arg1: i32) -> (i32, i32) {
    %c0_i32 = arith.constant 0 : i32
    %c0_i32_0 = arith.constant 0 : i32
    %c0_i32_1 = arith.constant 0 : i32
    return %c0_i32, %c0_i32_0 : i32, i32
  }
  func.func @transform_7(%arg0: i32, %arg1: i32) -> (i32, i32) {
    %c0_i32 = arith.constant 0 : i32
    %c0_i32_0 = arith.constant 0 : i32
    %c0_i32_1 = arith.constant 0 : i32
    return %c0_i32, %c0_i32_0 : i32, i32
  }
  func.func @transform_8(%arg0: i32, %arg1: i32) -> (i32, i32) {
    %c0_i32 = arith.constant 0 : i32
    %c0_i32_0 = arith.constant 0 : i32
    %c0_i32_1 = arith.constant 0 : i32
    return %c0_i32, %c0_i32_0 : i32, i32
  }
  func.func @transform_9(%arg0: i32, %arg1: i32) -> (i32, i32) {
    %c0_i32 = arith.constant 0 : i32
    %c0_i32_0 = arith.constant 0 : i32
    %c0_i32_1 = arith.constant 0 : i32
    return %c0_i32, %c0_i32_0 : i32, i32
  }
  func.func @transform_10(%arg0: i32, %arg1: i32) -> (i32, i32) {
    %c0_i32 = arith.constant 0 : i32
    %c0_i32_0 = arith.constant 0 : i32
    return %arg0, %c0_i32 : i32, i32
  }
  func.func @transform_11(%arg0: i32, %arg1: i32) -> (i32, i32) {
    %c0_i32 = arith.constant 0 : i32
    %c0_i32_0 = arith.constant 0 : i32
    return %arg0, %c0_i32 : i32, i32
  }
}

</mosaic_0001>

<bundles_post_ra>
// kernel: _lambda_.1
= control target key start
LH: loop header
LB: loop body
LE: loop exit
PB: predicated region body
PF: predicated region fallthrough
CT: control target
= control target key end

     0   :  { %vm85_vm0 = vcmask 1043456   ;;  %vm42_vm1 = vcmask 31744   ;;  %v2729_v44 = vmov 0.0   ;;  %v134_v45 = vlaneseq  ;;  %s3504_s0 = inlined_call_operand.vmem [shape: bf16[8,4,256], index: 0, kind: input, shape index: {}]   ;;  %s3505_s1 = inlined_call_operand.vmem [shape: bf16[4,512], index: 1, kind: input, shape index: {}]   ;;  %s3506_s3 = inlined_call_operand.vmem [shape: bf16[512,512], index: 3, kind: input, shape index: {}]   ;;  %s3507_s5 = inlined_call_operand.vmem [shape: bf16[512,128], index: 5, kind: input, shape index: {}]   ;;  %s3508_s2 = inlined_call_operand.vmem [shape: f32[1,512], index: 2, kind: input, shape index: {}]   ;;  %s3509_s7 = inlined_call_operand.vmem [shape: bf16[512,128], index: 7, kind: input, shape index: {}]   ;;  %s3510_s8 = inlined_call_operand.vmem [shape: bf16[128,128], index: 8, kind: input, shape index: {}]   ;;  %s3511_s4 = inlined_call_operand.vmem [shape: f32[1,512], index: 4, kind: input, shape index: {}]   ;;  %s3512_s6 = inlined_call_operand.vmem [shape: f32[1,128], index: 6, kind: input, shape index: {}]   ;;  %s3513_s11 = inlined_call_operand.vmem [shape: f32[8,128], index: 11, kind: output, shape index: {1}]   ;;  %s3514_s9 = inlined_call_operand.vmem [shape: f32[1,128], index: 9, kind: input, shape index: {}]   ;;  %s3515_s10 = inlined_call_operand.vmem [shape: f32[8,128], index: 10, kind: output, shape index: {0}]  }
   0x1   :  { %v2313_v0 = vld [vmem:[%s3504_s0] sm:$0xff]   ;;  %v2328_v1 = vld [vmem:[%s3504_s0 + $0x8] sm:$0xff]   ;;  %v2329_v2 = vld [vmem:[%s3504_s0 + $0x10] sm:$0xff]   ;;  %43 = vst.msk [vmem:[#allocation2] sm:$0xff] %vm42_vm1, %v2729_v44  ;;  %v2730_v46 = vmov 1983009808  }
   0x2   :  { %v2314_v3 = vunpack.c.l.bf16 %v2313_v0  ;;  %v2318_v4 = vunpack.c.l.bf16 %v2328_v1  ;;  %v2315_v5 = vunpack.c.h.bf16 %v2313_v0  ;;  %v2319_v6 = vunpack.c.h.bf16 %v2328_v1  ;;  %v2330_v7 = vld [vmem:[%s3504_s0 + $0x18] sm:$0xff]   ;;  %v191_v51 = vld [vmem:[%s3505_s1] sm:$0xff] }
   0x3   :  { %v2322_v8 = vunpack.c.l.bf16 %v2329_v2  ;;  %v2323_v9 = vunpack.c.h.bf16 %v2329_v2  ;;  %v2326_v10 = vunpack.c.l.bf16 %v2330_v7  ;;  %v2327_v18 = vunpack.c.h.bf16 %v2330_v7  ;;  %v2465_v60 = vld [vmem:[%s3506_s3 + $0x4] ss:$16 sps:$4 sm:$0xff]   ;;  %v2470_v61 = vld [vmem:[%s3506_s3] ss:$16 sps:$4 sm:$0xff]  }
   0x4   :  { %v69_v11 = vcombine.high %v2314_v3, %v2314_v3  ;;  %v86_v12 = vsel %vm85_vm0, %v2314_v3, 0.0  ;;  %v71_v13 = vcombine.high %v2318_v4, %v2318_v4  ;;  %v96_v14 = vsel %vm85_vm0, %v2318_v4, 0.0  ;;  %1124 = vmatprep.subr.bf16.mxu0 %v2465_v60  ;;  %v2471_v62 = vld [vmem:[%s3506_s3 + $0x24] ss:$16 sps:$4 sm:$0xff]   ;;  %v2476_v63 = vld [vmem:[%s3506_s3 + $0x20] ss:$16 sps:$4 sm:$0xff]  }
   0x5   :  { %v70_v15 = vcombine.high %v2315_v5, %v2315_v5  ;;  %v91_v16 = vsel %vm85_vm0, %v2315_v5, 0.0  ;;  %v72_v17 = vcombine.high %v2319_v6, %v2319_v6  ;;  %v101_v21 = vsel %vm85_vm0, %v2319_v6, 0.0  ;;  %1125 = vmatpush1.bf16.msra.mxu0 %v2470_v61  ;;  %v2477_v0 = vld [vmem:[%s3506_s3 + $0x44] ss:$16 sps:$4 sm:$0xff]   ;;  %v2482_v1 = vld [vmem:[%s3506_s3 + $0x40] ss:$16 sps:$4 sm:$0xff]  }
   0x6   :  { %v87_v19 = vsel %vm85_vm0, %v69_v11, 0.0  ;;  %v97_v20 = vsel %vm85_vm0, %v71_v13, 0.0  ;;  %v73_v22 = vcombine.high %v2322_v8, %v2322_v8  ;;  %v74_v27 = vcombine.high %v2323_v9, %v2323_v9  ;;  %1126 = vmatprep.subr.bf16.mxu0 %v2471_v62  ;;  %v2483_v2 = vld [vmem:[%s3506_s3 + $0x64] ss:$16 sps:$4 sm:$0xff]   ;;  %v2488_v3 = vld [vmem:[%s3506_s3 + $0x60] ss:$16 sps:$4 sm:$0xff]  }
   0x7   :  { %v88_v23 = vadd.f32 %v87_v19, %v86_v12  ;;  %v98_v24 = vadd.f32 %v97_v20, %v96_v14  ;;  %v92_v25 = vsel %vm85_vm0, %v70_v15, 0.0  ;;  %v102_v26 = vsel %vm85_vm0, %v72_v17, 0.0  ;;  %v2489_v4 = vld [vmem:[%s3506_s3 + $0x84] ss:$16 sps:$4 sm:$0xff]   ;;  %v2494_v5 = vld [vmem:[%s3506_s3 + $0x80] ss:$16 sps:$4 sm:$0xff]  }
   0x8   :  { %v93_v28 = vadd.f32 %v92_v25, %v91_v16  ;;  %v103_v29 = vadd.f32 %v102_v26, %v101_v21  ;;  %v106_v30 = vsel %vm85_vm0, %v2322_v8, 0.0  ;;  %v107_v31 = vsel %vm85_vm0, %v73_v22, 0.0  ;;  %v2495_v6 = vld [vmem:[%s3506_s3 + $0xa4] ss:$16 sps:$4 sm:$0xff]   ;;  %v2500_v7 = vld [vmem:[%s3506_s3 + $0xa0] ss:$16 sps:$4 sm:$0xff]  }
   0x9   :  { %89 = vadd.xlane.f32.xlu0 %v88_v23  ;;  %99 = vadd.xlane.f32.xlu1 %v98_v24  ;;  %v111_v32 = vsel %vm85_vm0, %v2323_v9, 0.0  ;;  %v112_v33 = vsel %vm85_vm0, %v74_v27, 0.0  ;;  %v75_v34 = vcombine.high %v2326_v10, %v2326_v10  ;;  %v76_v35 = vcombine.high %v2327_v18, %v2327_v18  ;;  %v2501_v8 = vld [vmem:[%s3506_s3 + $0xc4] ss:$16 sps:$4 sm:$0xff]   ;;  %v2506_v9 = vld [vmem:[%s3506_s3 + $0xc0] ss:$16 sps:$4 sm:$0xff]  }
   0xa   :  { %v108_v36 = vadd.f32 %v107_v31, %v106_v30  ;;  %v113_v37 = vadd.f32 %v112_v33, %v111_v32  ;;  %v116_v38 = vsel %vm85_vm0, %v2326_v10, 0.0  ;;  %v121_v40 = vsel %vm85_vm0, %v2327_v18, 0.0  ;;  %1127 = vmatpush1.bf16.msra.mxu0 %v2476_v63  ;;  %v2507_v10 = vld [vmem:[%s3506_s3 + $0xe4] ss:$16 sps:$4 sm:$0xff]   ;;  %v2512_v11 = vld [vmem:[%s3506_s3 + $0xe0] ss:$16 sps:$4 sm:$0xff]  }
   0xb   :  { %v117_v39 = vsel %vm85_vm0, %v75_v34, 0.0  ;;  %v122_v41 = vsel %vm85_vm0, %v76_v35, 0.0  ;;  %v217_v47 = vunpack.c.l.s4 %v2730_v46  ;;  %v2824_v48 = vshrl.u32 %v134_v45, 7  ;;  %1128 = vmatprep.subr.bf16.mxu0 %v2477_v0  ;;  %v2513_v12 = vld [vmem:[%s3506_s3 + $0x104] ss:$16 sps:$4 sm:$0xff]  }
   0xc   :  { %v118_v42 = vadd.f32 %v117_v39, %v116_v38  ;;  %v123_v43 = vadd.f32 %v122_v41, %v121_v40  ;;  %v2731_v50 = vmov 0   ;;  %vm235_vm2 = vcmask 1041408   ;;  %v2518_v13 = vld [vmem:[%s3506_s3 + $0x100] ss:$16 sps:$4 sm:$0xff]   ;;  %v2519_v14 = vld [vmem:[%s3506_s3 + $0x124] ss:$16 sps:$4 sm:$0xff]  }
   0xd   :  { %94 = vadd.xlane.f32.xlu0 %v93_v28  ;;  %104 = vadd.xlane.f32.xlu1 %v103_v29  ;;  %v218_v49 = vunpack.c.0.s8 %v217_v47  ;;  %v215_v53 = vcombine.high %v191_v51, %v191_v51  ;;  %v2524_v15 = vld [vmem:[%s3506_s3 + $0x120] ss:$16 sps:$4 sm:$0xff]   ;;  %v2525_v16 = vld [vmem:[%s3506_s3 + $0x144] ss:$16 sps:$4 sm:$0xff]   ;;  %v135_v26 = vand.u32 127, %v134_v45  ;;  %vm168_vm3 = vcmask 1041409  }
   0xe   :  { %280 = vmatprep.mubr.bf16.mxu1 %v2731_v50  ;;  %1129 = vmatpush1.bf16.msra.mxu0 %v2482_v1  ;;  %v2530_v17 = vld [vmem:[%s3506_s3 + $0x140] ss:$16 sps:$4 sm:$0xff]   ;;  %v2531_v18 = vld [vmem:[%s3506_s3 + $0x164] ss:$16 sps:$4 sm:$0xff]   ;;  %vm170_vm4 = vcmask 1042434   ;;  %vm172_vm5 = vcmask 1043459  }
   0xf   :  { %v221_v52 = vsub.s32 %v218_v49, %v2824_v48  ;;  %1130 = vmatprep.subr.bf16.mxu0 %v2483_v2  ;;  %v2536_v19 = vld [vmem:[%s3506_s3 + $0x160] ss:$16 sps:$4 sm:$0xff]   ;;  %v2537_v20 = vld [vmem:[%s3506_s3 + $0x184] ss:$16 sps:$4 sm:$0xff]   ;;  %v138_v29 = vsub.s32 %v135_v26, %v2824_v48  ;;  %vm174_vm6 = vcmask 1044484   ;;  %vm176_vm7 = vcmask 1045509  }
  0x10   :  { %v2542_v21 = vld [vmem:[%s3506_s3 + $0x180] ss:$16 sps:$4 sm:$0xff]   ;;  %v2543_v22 = vld [vmem:[%s3506_s3 + $0x1a4] ss:$16 sps:$4 sm:$0xff]   ;;  %vm178_vm8 = vcmask 1046534   ;;  %vm180_vm9 = vcmask 1047559  }
  0x11   :  { %109 = vadd.xlane.f32.xlu0 %v108_v36  ;;  %114 = vadd.xlane.f32.xlu1 %v113_v37  ;;  %v222_v54 = vrot.slane %v191_v51, %v221_v52  ;;  %v229_v57 = vrot.slane %v215_v53, %v221_v52  ;;  %v2548_v23 = vld [vmem:[%s3506_s3 + $0x1a0] ss:$16 sps:$4 sm:$0xff]   ;;  %v2549_v24 = vld [vmem:[%s3506_s3 + $0x1c4] ss:$16 sps:$4 sm:$0xff]   ;;  %v2467_v60 = vld [vmem:[%s3506_s3 + $0x8] ss:$16 sps:$4 sm:$0xff]  }
  0x12   :  { %1131 = vmatpush1.bf16.msra.mxu0 %v2488_v3  ;;  %v2554_v25 = vld [vmem:[%s3506_s3 + $0x1c0] ss:$16 sps:$4 sm:$0xff]   ;;  %v2475_v61 = vld [vmem:[%s3506_s3 + $0x2c] ss:$16 sps:$4 sm:$0xff]   ;;  %v2473_v62 = vld [vmem:[%s3506_s3 + $0x28] ss:$16 sps:$4 sm:$0xff]  }
  0x13   :  { %v230_v55 = vcombine.high %v222_v54, %v222_v54  ;;  %v237_v56 = vsel %vm235_vm2, %v222_v54, 0  ;;  %v231_v58 = vcombine.high %v229_v57, %v229_v57  ;;  %v2831_v59 = vsel %vm235_vm2, %v229_v57, 0  ;;  %1132 = vmatprep.subr.bf16.mxu0 %v2489_v4  ;;  %v44_v52 = vld [vmem:[#allocation2] sm:$0xff]  ;;  %v2487_v63 = vld [vmem:[%s3506_s3 + $0x6c] ss:$16 sps:$4 sm:$0xff]  }
  0x14   :  { %v2485_v0 = vld [vmem:[%s3506_s3 + $0x68] ss:$16 sps:$4 sm:$0xff]   ;;  %v2493_v1 = vld [vmem:[%s3506_s3 + $0x8c] ss:$16 sps:$4 sm:$0xff]   ;;  %v2560_v26 = vld [vmem:[%s3506_s3 + $0x1e0] ss:$16 sps:$4 sm:$0xff]  }
  0x15   :  { %119 = vadd.xlane.f32.xlu0 %v118_v42  ;;  %124 = vadd.xlane.f32.xlu1 %v123_v43  ;;  %v2491_v2 = vld [vmem:[%s3506_s3 + $0x88] ss:$16 sps:$4 sm:$0xff]   ;;  %v2499_v3 = vld [vmem:[%s3506_s3 + $0xac] ss:$16 sps:$4 sm:$0xff]   ;;  %vm2732_vm14 = vmmov 0  }
  0x16   :  { %2106 = vmatprep.subr.msk.bf16.mxu1 %vm235_vm2, %v230_v55  ;;  %1133 = vmatpush1.bf16.msra.mxu0 %v2494_v5  ;;  %v2497_v4 = vld [vmem:[%s3506_s3 + $0xa8] ss:$16 sps:$4 sm:$0xff]   ;;  %v2505_v5 = vld [vmem:[%s3506_s3 + $0xcc] ss:$16 sps:$4 sm:$0xff]  }
  0x17   :  { %249 = vmatpush1.bf16.msra.mxu1 %v237_v56  ;;  %1134 = vmatprep.subr.bf16.mxu0 %v2495_v6  ;;  %v2503_v6 = vld [vmem:[%s3506_s3 + $0xc8] ss:$16 sps:$4 sm:$0xff]  }
  0x18   :  { %2108 = vmatprep.subr.msk.bf16.mxu1 %vm235_vm2, %v231_v58  ;;  %v2469_v58 = vld [vmem:[%s3506_s3 + $0xc] ss:$16 sps:$4 sm:$0xff]  }
  0x1a   :  { %1135 = vmatpush1.bf16.msra.mxu0 %v2500_v7  ;;  %v2511_v7 = vld [vmem:[%s3506_s3 + $0xec] ss:$16 sps:$4 sm:$0xff]  }
  0x1b   :  { %1136 = vmatprep.subr.bf16.mxu0 %v2501_v8  ;;  %v2509_v8 = vld [vmem:[%s3506_s3 + $0xe8] ss:$16 sps:$4 sm:$0xff]  }
  0x1e   :  { %1137 = vmatpush1.bf16.msra.mxu0 %v2506_v9  ;;  %v2517_v9 = vld [vmem:[%s3506_s3 + $0x10c] ss:$16 sps:$4 sm:$0xff]  }
  0x1f   :  { %1138 = vmatprep.subr.bf16.mxu0 %v2507_v10  ;;  %v2515_v10 = vld [vmem:[%s3506_s3 + $0x108] ss:$16 sps:$4 sm:$0xff]  }
  0x22   :  { %1139 = vmatpush1.bf16.msra.mxu0 %v2512_v11  ;;  %v2523_v11 = vld [vmem:[%s3506_s3 + $0x12c] ss:$16 sps:$4 sm:$0xff]  }
  0x23   :  { %1140 = vmatprep.subr.bf16.mxu0 %v2513_v12  ;;  %v2521_v12 = vld [vmem:[%s3506_s3 + $0x128] ss:$16 sps:$4 sm:$0xff]  }
  0x26   :  { %1141 = vmatpush1.bf16.msra.mxu0 %v2518_v13  ;;  %v2529_v13 = vld [vmem:[%s3506_s3 + $0x14c] ss:$16 sps:$4 sm:$0xff]  }
  0x27   :  { %1142 = vmatprep.subr.bf16.mxu0 %v2519_v14  ;;  %v2527_v14 = vld [vmem:[%s3506_s3 + $0x148] ss:$16 sps:$4 sm:$0xff]  }
  0x2a   :  { %1143 = vmatpush1.bf16.msra.mxu0 %v2524_v15  ;;  %v2535_v15 = vld [vmem:[%s3506_s3 + $0x16c] ss:$16 sps:$4 sm:$0xff]  }
  0x2b   :  { %1144 = vmatprep.subr.bf16.mxu0 %v2525_v16  ;;  %v2533_v16 = vld [vmem:[%s3506_s3 + $0x168] ss:$16 sps:$4 sm:$0xff]  }
  0x2e   :  { %1145 = vmatpush1.bf16.msra.mxu0 %v2530_v17  ;;  %v2541_v17 = vld [vmem:[%s3506_s3 + $0x18c] ss:$16 sps:$4 sm:$0xff]  }
  0x2f   :  { %1146 = vmatprep.subr.bf16.mxu0 %v2531_v18  ;;  %v2539_v18 = vld [vmem:[%s3506_s3 + $0x188] ss:$16 sps:$4 sm:$0xff]  }
  0x32   :  { %1147 = vmatpush1.bf16.msra.mxu0 %v2536_v19  ;;  %v2547_v19 = vld [vmem:[%s3506_s3 + $0x1ac] ss:$16 sps:$4 sm:$0xff]  }
  0x33   :  { %1148 = vmatprep.subr.bf16.mxu0 %v2537_v20  ;;  %v2545_v20 = vld [vmem:[%s3506_s3 + $0x1a8] ss:$16 sps:$4 sm:$0xff]  }
  0x36   :  { %1149 = vmatpush1.bf16.msra.mxu0 %v2542_v21  ;;  %v2553_v21 = vld [vmem:[%s3506_s3 + $0x1cc] ss:$16 sps:$4 sm:$0xff]  }
  0x37   :  { %1150 = vmatprep.subr.bf16.mxu0 %v2543_v22  ;;  %v2551_v22 = vld [vmem:[%s3506_s3 + $0x1c8] ss:$16 sps:$4 sm:$0xff]  }
  0x3a   :  { %1151 = vmatpush1.bf16.msra.mxu0 %v2548_v23  ;;  %v2555_v23 = vld [vmem:[%s3506_s3 + $0x1e4] ss:$16 sps:$4 sm:$0xff]  }
  0x3b   :  { %1152 = vmatprep.subr.bf16.mxu0 %v2549_v24  ;;  %v2559_v24 = vld [vmem:[%s3506_s3 + $0x1ec] ss:$16 sps:$4 sm:$0xff]  }
  0x3e   :  { %1153 = vmatpush1.bf16.msra.mxu0 %v2554_v25  ;;  %v2557_v25 = vld [vmem:[%s3506_s3 + $0x1e8] ss:$16 sps:$4 sm:$0xff]  }
  0x3f   :  { %1154 = vmatprep.subr.bf16.mxu0 %v2555_v23  ;;  %v2620_v23 = vld [vmem:[%s3506_s3 + $0x32c] ss:$16 sps:$4 sm:$0xff]  }
  0x42   :  { %1155 = vmatpush1.bf16.msra.mxu0 %v2560_v26  ;;  %v2623_v26 = vld [vmem:[%s3506_s3 + $0x344] ss:$16 sps:$4 sm:$0xff]  }
  0x96   :  { %v90_v27 = vpop.xlane.xlu0 %89  ;;  %v100_v28 = vpop.xlane.xlu1 %99 }
  0x97   :  { %v139_v32 = vrot.slane %v90_v27, %v138_v29  ;;  %v147_v35 = vrot.slane %v100_v28, %v138_v29  ;;  %v2563_v27 = vld [vmem:[%s3506_s3 + $0x204] ss:$16 sps:$4 sm:$0xff]   ;;  %v2566_v28 = vld [vmem:[%s3506_s3 + $0x20c] ss:$16 sps:$4 sm:$0xff]  }
  0x98   :  { %1165 = vmatprep.subr.bf16.mxu0 %v2563_v27  ;;  %v2626_v27 = vld [vmem:[%s3506_s3 + $0x34c] ss:$16 sps:$4 sm:$0xff]  }
  0x9a   :  { %v95_v30 = vpop.xlane.xlu0 %94  ;;  %v105_v31 = vpop.xlane.xlu1 %104 }
  0x9b   :  { %v143_v33 = vrot.slane %v95_v30, %v138_v29  ;;  %v151_v34 = vrot.slane %v105_v31, %v138_v29  ;;  %v3042_v30 = vld [vmem:[%s3508_s2] sm:$0xf]  ;;  %v200_v31 = vsub.s32 1, %v2824_v48 }
  0x9d   :  { %v169_v36 = vsel %vm168_vm3, %v143_v33, %v139_v32  ;;  %v201_v33 = vrot.slane %v3042_v30, %v200_v31 }
  0x9e   :  { %v171_v37 = vsel %vm170_vm4, %v147_v35, %v169_v36  ;;  %v110_v38 = vpop.xlane.xlu0 %109  ;;  %v115_v39 = vpop.xlane.xlu1 %114 }
  0x9f   :  { %v173_v40 = vsel %vm172_vm5, %v151_v34, %v171_v37  ;;  %v155_v41 = vrot.slane %v110_v38, %v138_v29  ;;  %v159_v42 = vrot.slane %v115_v39, %v138_v29  ;;  %v208_v39 = vsub.s32 3, %v2824_v48 }
  0xa1   :  { %v175_v43 = vsel %vm174_vm6, %v155_v41, %v173_v40 }
  0xa2   :  { %v120_v45 = vpop.xlane.xlu0 %119  ;;  %v125_v46 = vpop.xlane.xlu1 %124  ;;  %v177_v51 = vsel %vm176_vm7, %v159_v42, %v175_v43  ;;  %v2561_v42 = vld [vmem:[%s3506_s3 + $0x200] ss:$16 sps:$4 sm:$0xff]   ;;  %v2564_v43 = vld [vmem:[%s3506_s3 + $0x208] ss:$16 sps:$4 sm:$0xff]  }
  0xa3   :  { %v163_v47 = vrot.slane %v120_v45, %v138_v29  ;;  %v167_v49 = vrot.slane %v125_v46, %v138_v29  ;;  %v196_v29 = vsub.s32 0, %v2824_v48  ;;  %v2569_v46 = vld [vmem:[%s3506_s3 + $0x224] ss:$16 sps:$4 sm:$0xff]  }
  0xa5   :  { %v179_v53 = vsel %vm178_vm8, %v163_v47, %v177_v51  ;;  %v197_v32 = vrot.slane %v3042_v30, %v196_v29  ;;  %v2572_v47 = vld [vmem:[%s3506_s3 + $0x22c] ss:$16 sps:$4 sm:$0xff]  }
  0xa6   :  { %v181_v54 = vsel %vm180_vm9, %v167_v49, %v179_v53  ;;  %v209_v49 = vrot.slane %v3042_v30, %v208_v39  ;;  %v2570_v53 = vld [vmem:[%s3506_s3 + $0x228] ss:$16 sps:$4 sm:$0xff]  }
  0xa7   :  { %v183_v55 = vadd.f32 %v181_v54, %v44_v52  ;;  %v2567_v52 = vld [vmem:[%s3506_s3 + $0x220] ss:$16 sps:$4 sm:$0xff]  }
  0xa9   :  { %185 = vst.msk [vmem:[#allocation2] sm:$0xff] %vm42_vm1, %v183_v55  ;;  %v2575_v55 = vld [vmem:[%s3506_s3 + $0x244] ss:$16 sps:$4 sm:$0xff]  }
  0xb0   :  { %v189_v56 = vld [vmem:[#allocation2] sm:$0xff] }
  0xb1   :  { %v190_v57 = vpack.c.bf16 %v189_v56, %v189_v56  ;;  %v2578_v56 = vld [vmem:[%s3506_s3 + $0x24c] ss:$16 sps:$4 sm:$0xff]  }
  0xb3   :  { %2107 = vmatmul.mubr.msk.bf16.vlgmr.msra.gmra.mrb[0].mxu1 %vm42_vm1, %v190_v57 }
  0xb4   :  { %290 = vmatpush1.bf16.msra.mxu1 %v2831_v59  ;;  %321 = vmatprep.mubr.bf16.mxu1 %v2731_v50  ;;  %v2481_v50 = vld [vmem:[%s3506_s3 + $0x4c] ss:$16 sps:$4 sm:$0xff]   ;;  %v2479_v59 = vld [vmem:[%s3506_s3 + $0x48] ss:$16 sps:$4 sm:$0xff]  }
  0xb5   :  { %1206 = vmatprep.subr.bf16.mxu1 %v2469_v58 }
  0xbb   :  { %2109 = vmatmul.mubr.msk.bf16.vlgmr.msra.gmra.mrb[4].mxu1 %vm42_vm1, %v190_v57 }
  0xbc   :  { %1207 = vmatpush1.bf16.msra.mxu1 %v2467_v60 }
  0xbd   :  { %1208 = vmatprep.subr.bf16.mxu1 %v2475_v61 }
  0xc0   :  { %1209 = vmatpush1.bf16.msra.mxu1 %v2473_v62  ;;  %v2573_v62 = vld [vmem:[%s3506_s3 + $0x240] ss:$16 sps:$4 sm:$0xff]  }
  0xc1   :  { %1210 = vmatprep.subr.bf16.mxu1 %v2481_v50  ;;  %v2576_v50 = vld [vmem:[%s3506_s3 + $0x248] ss:$16 sps:$4 sm:$0xff]  }
  0xc4   :  { %1211 = vmatpush1.bf16.msra.mxu1 %v2479_v59  ;;  %v2581_v59 = vld [vmem:[%s3506_s3 + $0x264] ss:$16 sps:$4 sm:$0xff]  }
  0xc5   :  { %1212 = vmatprep.subr.bf16.mxu1 %v2487_v63  ;;  %v2584_v63 = vld [vmem:[%s3506_s3 + $0x26c] ss:$16 sps:$4 sm:$0xff]  }
  0xc8   :  { %1213 = vmatpush1.bf16.msra.mxu1 %v2485_v0  ;;  %v2579_v0 = vld [vmem:[%s3506_s3 + $0x260] ss:$16 sps:$4 sm:$0xff]  }
  0xc9   :  { %1214 = vmatprep.subr.bf16.mxu1 %v2493_v1  ;;  %v2582_v1 = vld [vmem:[%s3506_s3 + $0x268] ss:$16 sps:$4 sm:$0xff]  }
  0xcc   :  { %1215 = vmatpush1.bf16.msra.mxu1 %v2491_v2  ;;  %v2587_v2 = vld [vmem:[%s3506_s3 + $0x284] ss:$16 sps:$4 sm:$0xff]  }
  0xcd   :  { %1216 = vmatprep.subr.bf16.mxu1 %v2499_v3  ;;  %v2590_v3 = vld [vmem:[%s3506_s3 + $0x28c] ss:$16 sps:$4 sm:$0xff]  }
  0xd0   :  { %1217 = vmatpush1.bf16.msra.mxu1 %v2497_v4  ;;  %v2585_v4 = vld [vmem:[%s3506_s3 + $0x280] ss:$16 sps:$4 sm:$0xff]  }
  0xd1   :  { %1218 = vmatprep.subr.bf16.mxu1 %v2505_v5  ;;  %v2588_v5 = vld [vmem:[%s3506_s3 + $0x288] ss:$16 sps:$4 sm:$0xff]  }
  0xd4   :  { %1219 = vmatpush1.bf16.msra.mxu1 %v2503_v6  ;;  %v2593_v6 = vld [vmem:[%s3506_s3 + $0x2a4] ss:$16 sps:$4 sm:$0xff]  }
  0xd5   :  { %1220 = vmatprep.subr.bf16.mxu1 %v2511_v7  ;;  %v2596_v7 = vld [vmem:[%s3506_s3 + $0x2ac] ss:$16 sps:$4 sm:$0xff]  }
  0xd8   :  { %1221 = vmatpush1.bf16.msra.mxu1 %v2509_v8  ;;  %v2591_v8 = vld [vmem:[%s3506_s3 + $0x2a0] ss:$16 sps:$4 sm:$0xff]  }
  0xd9   :  { %1222 = vmatprep.subr.bf16.mxu1 %v2517_v9  ;;  %v2594_v9 = vld [vmem:[%s3506_s3 + $0x2a8] ss:$16 sps:$4 sm:$0xff]  }
  0xdc   :  { %1223 = vmatpush1.bf16.msra.mxu1 %v2515_v10  ;;  %v2599_v10 = vld [vmem:[%s3506_s3 + $0x2c4] ss:$16 sps:$4 sm:$0xff]  }
  0xdd   :  { %1224 = vmatprep.subr.bf16.mxu1 %v2523_v11  ;;  %v2602_v11 = vld [vmem:[%s3506_s3 + $0x2cc] ss:$16 sps:$4 sm:$0xff]  }
  0xe0   :  { %1225 = vmatpush1.bf16.msra.mxu1 %v2521_v12  ;;  %v2597_v12 = vld [vmem:[%s3506_s3 + $0x2c0] ss:$16 sps:$4 sm:$0xff]  }
  0xe1   :  { %1226 = vmatprep.subr.bf16.mxu1 %v2529_v13  ;;  %v2600_v13 = vld [vmem:[%s3506_s3 + $0x2c8] ss:$16 sps:$4 sm:$0xff]  }
  0xe4   :  { %1227 = vmatpush1.bf16.msra.mxu1 %v2527_v14  ;;  %v2605_v14 = vld [vmem:[%s3506_s3 + $0x2e4] ss:$16 sps:$4 sm:$0xff]  }
  0xe5   :  { %1228 = vmatprep.subr.bf16.mxu1 %v2535_v15  ;;  %v2608_v15 = vld [vmem:[%s3506_s3 + $0x2ec] ss:$16 sps:$4 sm:$0xff]  }
  0xe8   :  { %1229 = vmatpush1.bf16.msra.mxu1 %v2533_v16  ;;  %v2603_v16 = vld [vmem:[%s3506_s3 + $0x2e0] ss:$16 sps:$4 sm:$0xff]  }
  0xe9   :  { %1230 = vmatprep.subr.bf16.mxu1 %v2541_v17  ;;  %v2606_v17 = vld [vmem:[%s3506_s3 + $0x2e8] ss:$16 sps:$4 sm:$0xff]  }
  0xec   :  { %1231 = vmatpush1.bf16.msra.mxu1 %v2539_v18  ;;  %v2611_v18 = vld [vmem:[%s3506_s3 + $0x304] ss:$16 sps:$4 sm:$0xff]  }
  0xed   :  { %1232 = vmatprep.subr.bf16.mxu1 %v2547_v19  ;;  %v2614_v19 = vld [vmem:[%s3506_s3 + $0x30c] ss:$16 sps:$4 sm:$0xff]  }
  0xf0   :  { %1233 = vmatpush1.bf16.msra.mxu1 %v2545_v20  ;;  %v2609_v20 = vld [vmem:[%s3506_s3 + $0x300] ss:$16 sps:$4 sm:$0xff]  }
  0xf1   :  { %1234 = vmatprep.subr.bf16.mxu1 %v2553_v21  ;;  %v2612_v21 = vld [vmem:[%s3506_s3 + $0x308] ss:$16 sps:$4 sm:$0xff]  }
  0xf4   :  { %1235 = vmatpush1.bf16.msra.mxu1 %v2551_v22  ;;  %v2617_v22 = vld [vmem:[%s3506_s3 + $0x324] ss:$16 sps:$4 sm:$0xff]  }
  0xf5   :  { %1236 = vmatprep.subr.bf16.mxu1 %v2559_v24  ;;  %v2615_v24 = vld [vmem:[%s3506_s3 + $0x320] ss:$16 sps:$4 sm:$0xff]  }
  0xf8   :  { %1237 = vmatpush1.bf16.msra.mxu1 %v2557_v25  ;;  %v2618_v25 = vld [vmem:[%s3506_s3 + $0x328] ss:$16 sps:$4 sm:$0xff]  }
  0xf9   :  { %1247 = vmatprep.subr.bf16.mxu1 %v2566_v28  ;;  %v2621_v28 = vld [vmem:[%s3506_s3 + $0x340] ss:$16 sps:$4 sm:$0xff]  }
 0x186   :  { %v282_v34 = vpop.f32.mrb[0].mxu1 }
 0x187   :  { %v283_v35 = vadd.f32 %v282_v34, %v197_v32  ;;  %v284_v36 = vpop.f32.mrb[1].mxu1  ;;  %v2624_v32 = vld [vmem:[%s3506_s3 + $0x348] ss:$16 sps:$4 sm:$0xff]   ;;  %v2632_v34 = vld [vmem:[%s3506_s3 + $0x36c] ss:$16 sps:$4 sm:$0xff]  }
 0x188   :  { %v285_v37 = vadd.f32 %v284_v36, %v201_v33  ;;  %v286_v38 = vpop.f32.mrb[2].mxu1  ;;  %v2629_v33 = vld [vmem:[%s3506_s3 + $0x364] ss:$16 sps:$4 sm:$0xff]   ;;  %v2630_v36 = vld [vmem:[%s3506_s3 + $0x368] ss:$16 sps:$4 sm:$0xff]  }
 0x189   :  { %v287_v40 = vpop.f32.mrb[3].mxu1  ;;  %v330_v45 = vpack.c.bf16 %v283_v35, %v283_v35  ;;  %v2627_v35 = vld [vmem:[%s3506_s3 + $0x360] ss:$16 sps:$4 sm:$0xff]   ;;  %v2638_v38 = vld [vmem:[%s3506_s3 + $0x38c] ss:$16 sps:$4 sm:$0xff]  }
 0x18a   :  { %v331_v41 = vpack.c.bf16 %v285_v37, %v285_v37  ;;  %v2635_v37 = vld [vmem:[%s3506_s3 + $0x384] ss:$16 sps:$4 sm:$0xff]   ;;  %v2633_v40 = vld [vmem:[%s3506_s3 + $0x380] ss:$16 sps:$4 sm:$0xff]  }
 0x18c   :  { %1156 = vmatprep.mubr.bf16.mxu0 %v331_v41  ;;  %1238 = vmatprep.mubr.bf16.mxu1 %v331_v41  ;;  %v2636_v41 = vld [vmem:[%s3506_s3 + $0x388] ss:$16 sps:$4 sm:$0xff]  }
 0x18d   :  { %1157 = vmatmul.mubr.bf16.vlgmr.msra.gmra.mrb[0].mxu0 %v330_v45  ;;  %1239 = vmatmul.mubr.bf16.vlgmr.msra.gmra.mrb[8].mxu1 %v330_v45  ;;  %v2639_v45 = vld [vmem:[%s3506_s3 + $0x3a0] ss:$16 sps:$4 sm:$0xff]  }
 0x18e   :  { %1166 = vmatpush1.bf16.msra.mxu0 %v2561_v42  ;;  %1248 = vmatpush1.bf16.msra.mxu1 %v2564_v43  ;;  %v3067_v51 = vpop.f32.mrb[4].mxu1  ;;  %v2641_v42 = vld [vmem:[%s3506_s3 + $0x3a4] ss:$16 sps:$4 sm:$0xff]   ;;  %v2644_v43 = vld [vmem:[%s3506_s3 + $0x3ac] ss:$16 sps:$4 sm:$0xff]  }
 0x18f   :  { %v325_v54 = vpop.f32.mrb[5].mxu1  ;;  %1167 = vmatprep.subr.bf16.mxu0 %v2569_v46  ;;  %1249 = vmatprep.subr.bf16.mxu1 %v2572_v47  ;;  %v2642_v46 = vld [vmem:[%s3506_s3 + $0x3a8] ss:$16 sps:$4 sm:$0xff]   ;;  %v204_v47 = vsub.s32 2, %v2824_v48 }
 0x190   :  { %v326_v57 = vadd.f32 %v325_v54, %v209_v49  ;;  %v327_v58 = vpop.f32.mrb[6].mxu1  ;;  %v2647_v49 = vld [vmem:[%s3506_s3 + $0x3c4] ss:$16 sps:$4 sm:$0xff]   ;;  %v2648_v54 = vld [vmem:[%s3506_s3 + $0x3c8] ss:$16 sps:$4 sm:$0xff]  }
 0x191   :  { %v328_v60 = vpop.f32.mrb[7].mxu1  ;;  %v2651_v58 = vld [vmem:[%s3506_s3 + $0x3e0] ss:$16 sps:$4 sm:$0xff]  }
 0x192   :  { %v333_v61 = vpack.c.bf16 %v326_v57, %v326_v57  ;;  %1168 = vmatpush1.bf16.msra.mxu0 %v2567_v52  ;;  %1250 = vmatpush1.bf16.msra.mxu1 %v2570_v53  ;;  %v2650_v52 = vld [vmem:[%s3506_s3 + $0x3cc] ss:$16 sps:$4 sm:$0xff]   ;;  %v2645_v53 = vld [vmem:[%s3506_s3 + $0x3c0] ss:$16 sps:$4 sm:$0xff]  }
 0x193   :  { %1169 = vmatprep.subr.bf16.mxu0 %v2575_v55  ;;  %1251 = vmatprep.subr.bf16.mxu1 %v2578_v56  ;;  %v205_v55 = vrot.slane %v3042_v30, %v204_v47  ;;  %v2653_v56 = vld [vmem:[%s3506_s3 + $0x3e4] ss:$16 sps:$4 sm:$0xff]   ;;  %v2656_v57 = vld [vmem:[%s3506_s3 + $0x3ec] ss:$16 sps:$4 sm:$0xff]   ;;  %v2654_v30 = vld [vmem:[%s3506_s3 + $0x3e8] ss:$16 sps:$4 sm:$0xff]  }
 0x194   :  { %1197 = vmatprep.mubr.bf16.mxu0 %v333_v61  ;;  %1279 = vmatprep.mubr.bf16.mxu1 %v333_v61  ;;  %v2657_v61 = vld [vmem:[%s3507_s5 + $0xc0] sm:$0xff]  }
 0x195   :  { %v324_v60 = vadd.f32 %v3067_v51, %v205_v55  ;;  %v2660_v51 = vld [vmem:[%s3507_s5] sm:$0xff]  }
 0x196   :  { %1170 = vmatpush1.bf16.msra.mxu0 %v2573_v62  ;;  %1252 = vmatpush1.bf16.msra.mxu1 %v2576_v50  ;;  %v2658_v62 = vld [vmem:[%s3507_s5 + $0x40] sm:$0xff]  }
 0x197   :  { %1171 = vmatprep.subr.bf16.mxu0 %v2581_v59  ;;  %1253 = vmatprep.subr.bf16.mxu1 %v2584_v63  ;;  %v2659_v50 = vld [vmem:[%s3507_s5 + $0x80] sm:$0xff]   ;;  %v332_v59 = vpack.c.bf16 %v324_v60, %v324_v60  ;;  %v2661_v63 = vld [vmem:[%s3507_s5 + $0xc8] sm:$0xff]  }
 0x19a   :  { %1172 = vmatpush1.bf16.msra.mxu0 %v2579_v0  ;;  %1254 = vmatpush1.bf16.msra.mxu1 %v2582_v1  ;;  %v2662_v0 = vld [vmem:[%s3507_s5 + $0x48] sm:$0xff]  }
 0x19b   :  { %1173 = vmatprep.subr.bf16.mxu0 %v2587_v2  ;;  %1255 = vmatprep.subr.bf16.mxu1 %v2590_v3  ;;  %v2663_v1 = vld [vmem:[%s3507_s5 + $0x88] sm:$0xff]   ;;  %v2665_v3 = vld [vmem:[%s3507_s5 + $0xd0] sm:$0xff]  }
 0x19c   :  { %v2664_v2 = vld [vmem:[%s3507_s5 + $0x8] sm:$0xff]  }
 0x19e   :  { %1174 = vmatpush1.bf16.msra.mxu0 %v2585_v4  ;;  %1256 = vmatpush1.bf16.msra.mxu1 %v2588_v5  ;;  %v2666_v4 = vld [vmem:[%s3507_s5 + $0x50] sm:$0xff]  }
 0x19f   :  { %1175 = vmatprep.subr.bf16.mxu0 %v2593_v6  ;;  %1257 = vmatprep.subr.bf16.mxu1 %v2596_v7  ;;  %v2667_v5 = vld [vmem:[%s3507_s5 + $0x90] sm:$0xff]   ;;  %v2669_v7 = vld [vmem:[%s3507_s5 + $0xd8] sm:$0xff]  }
 0x1a0   :  { %v2668_v6 = vld [vmem:[%s3507_s5 + $0x10] sm:$0xff]  }
 0x1a2   :  { %1176 = vmatpush1.bf16.msra.mxu0 %v2591_v8  ;;  %1258 = vmatpush1.bf16.msra.mxu1 %v2594_v9  ;;  %v2670_v8 = vld [vmem:[%s3507_s5 + $0x58] sm:$0xff]  }
 0x1a3   :  { %1177 = vmatprep.subr.bf16.mxu0 %v2599_v10  ;;  %1259 = vmatprep.subr.bf16.mxu1 %v2602_v11  ;;  %v2671_v9 = vld [vmem:[%s3507_s5 + $0x98] sm:$0xff]   ;;  %v2673_v11 = vld [vmem:[%s3507_s5 + $0xe0] sm:$0xff]  }
 0x1a4   :  { %v2672_v10 = vld [vmem:[%s3507_s5 + $0x18] sm:$0xff]  }
 0x1a6   :  { %1178 = vmatpush1.bf16.msra.mxu0 %v2597_v12  ;;  %1260 = vmatpush1.bf16.msra.mxu1 %v2600_v13  ;;  %v2674_v12 = vld [vmem:[%s3507_s5 + $0x60] sm:$0xff]  }
 0x1a7   :  { %1179 = vmatprep.subr.bf16.mxu0 %v2605_v14  ;;  %1261 = vmatprep.subr.bf16.mxu1 %v2608_v15  ;;  %v2675_v13 = vld [vmem:[%s3507_s5 + $0xa0] sm:$0xff]   ;;  %v2677_v15 = vld [vmem:[%s3507_s5 + $0xe8] sm:$0xff]  }
 0x1a8   :  { %v2676_v14 = vld [vmem:[%s3507_s5 + $0x20] sm:$0xff]  }
 0x1aa   :  { %1180 = vmatpush1.bf16.msra.mxu0 %v2603_v16  ;;  %1262 = vmatpush1.bf16.msra.mxu1 %v2606_v17  ;;  %v2678_v16 = vld [vmem:[%s3507_s5 + $0x68] sm:$0xff]  }
 0x1ab   :  { %1181 = vmatprep.subr.bf16.mxu0 %v2611_v18  ;;  %1263 = vmatprep.subr.bf16.mxu1 %v2614_v19  ;;  %v2679_v17 = vld [vmem:[%s3507_s5 + $0xa8] sm:$0xff]   ;;  %v2681_v19 = vld [vmem:[%s3507_s5 + $0xf0] sm:$0xff]  }
 0x1ac   :  { %v2680_v18 = vld [vmem:[%s3507_s5 + $0x28] sm:$0xff]  }
 0x1ae   :  { %1182 = vmatpush1.bf16.msra.mxu0 %v2609_v20  ;;  %1264 = vmatpush1.bf16.msra.mxu1 %v2612_v21  ;;  %v2682_v20 = vld [vmem:[%s3507_s5 + $0x70] sm:$0xff]  }
 0x1af   :  { %1183 = vmatprep.subr.bf16.mxu0 %v2617_v22  ;;  %1265 = vmatprep.subr.bf16.mxu1 %v2620_v23  ;;  %v2683_v21 = vld [vmem:[%s3507_s5 + $0xb0] sm:$0xff]   ;;  %v2685_v23 = vld [vmem:[%s3507_s5 + $0xf8] sm:$0xff]  }
 0x1b0   :  { %v2684_v22 = vld [vmem:[%s3507_s5 + $0x30] sm:$0xff]  }
 0x1b2   :  { %1184 = vmatpush1.bf16.msra.mxu0 %v2615_v24  ;;  %1266 = vmatpush1.bf16.msra.mxu1 %v2618_v25  ;;  %v2686_v24 = vld [vmem:[%s3507_s5 + $0x78] sm:$0xff]  }
 0x1b3   :  { %1185 = vmatprep.subr.bf16.mxu0 %v2623_v26  ;;  %1267 = vmatprep.subr.bf16.mxu1 %v2626_v27  ;;  %v2687_v25 = vld [vmem:[%s3507_s5 + $0xb8] sm:$0xff]   ;;  %v2689_v27 = vld [vmem:[%s3509_s7 + $0x40] sm:$0xff]  }
 0x1b4   :  { %v2688_v26 = vld [vmem:[%s3507_s5 + $0x38] sm:$0xff]  }
 0x1b6   :  { %1186 = vmatpush1.bf16.msra.mxu0 %v2621_v28  ;;  %1268 = vmatpush1.bf16.msra.mxu1 %v2624_v32  ;;  %v462_v28 = vld [vmem:[%s3511_s4] sm:$0xf] }
 0x1b7   :  { %1187 = vmatprep.subr.bf16.mxu0 %v2629_v33  ;;  %1269 = vmatprep.subr.bf16.mxu1 %v2632_v34  ;;  %v467_v32 = vrot.slane %v462_v28, %v196_v29  ;;  %v475_v33 = vrot.slane %v462_v28, %v204_v47  ;;  %v471_v34 = vrot.slane %v462_v28, %v200_v31 }
 0x1ba   :  { %1188 = vmatpush1.bf16.msra.mxu0 %v2627_v35  ;;  %1270 = vmatpush1.bf16.msra.mxu1 %v2630_v36  ;;  %v479_v35 = vrot.slane %v462_v28, %v208_v39 }
 0x1bb   :  { %1189 = vmatprep.subr.bf16.mxu0 %v2635_v37  ;;  %1271 = vmatprep.subr.bf16.mxu1 %v2638_v38 }
 0x1be   :  { %1190 = vmatpush1.bf16.msra.mxu0 %v2633_v40  ;;  %1272 = vmatpush1.bf16.msra.mxu1 %v2636_v41 }
 0x1bf   :  { %1191 = vmatprep.subr.bf16.mxu0 %v2641_v42  ;;  %1273 = vmatprep.subr.bf16.mxu1 %v2644_v43 }
 0x1c2   :  { %1192 = vmatpush1.bf16.msra.mxu0 %v2639_v45  ;;  %1274 = vmatpush1.bf16.msra.mxu1 %v2642_v46 }
 0x1c3   :  { %1193 = vmatprep.subr.bf16.mxu0 %v2647_v49  ;;  %1275 = vmatprep.subr.bf16.mxu1 %v2650_v52 }
 0x1c6   :  { %1194 = vmatpush1.bf16.msra.mxu0 %v2645_v53  ;;  %1276 = vmatpush1.bf16.msra.mxu1 %v2648_v54 }
 0x1c7   :  { %1195 = vmatprep.subr.bf16.mxu0 %v2653_v56  ;;  %1277 = vmatprep.subr.bf16.mxu1 %v2656_v57 }
 0x1ca   :  { %1196 = vmatpush1.bf16.msra.mxu0 %v2651_v58  ;;  %1278 = vmatpush1.bf16.msra.mxu1 %v2654_v30  ;;  %v2690_v30 = vld [vmem:[%s3509_s7] sm:$0xff]  }
 0x1cb   :  { %2353 = vmatprep.subr.bf16.mxu1 %v2657_v61  ;;  %2331 = vmatprep.subr.bf16.mxu0 %v2658_v62  ;;  %v2691_v62 = vld [vmem:[%s3509_s7 + $0x48] sm:$0xff]  }
 0x1cd   :  { %1198 = vmatmul.mubr.bf16.vlgmr.msra.gmra.mrb[0].mxu0 %v332_v59  ;;  %1280 = vmatmul.mubr.bf16.vlgmr.msra.gmra.mrb[8].mxu1 %v332_v59  ;;  %v2693_v59 = vld [vmem:[%s3509_s7 + $0x50] sm:$0xff]  }
 0x1ce   :  { %2354 = vmatpush3.bf16.msra.mxu1 %v2659_v50  ;;  %2332 = vmatpush3.bf16.msra.mxu0 %v2660_v51  ;;  %v2705_v50 = vld [vmem:[%s3510_s8] sm:$0xff]   ;;  %v2692_v51 = vld [vmem:[%s3509_s7 + $0x8] sm:$0xff]  }
 0x1cf   :  { %2355 = vmatprep.subr.bf16.mxu1 %v2661_v63  ;;  %2333 = vmatprep.subr.bf16.mxu0 %v2662_v0  ;;  %v2706_v63 = vld [vmem:[%s3510_s8 + $0x8] sm:$0xff]   ;;  %v2694_v0 = vld [vmem:[%s3509_s7 + $0x10] sm:$0xff]  }
 0x1d2   :  { %2356 = vmatpush3.bf16.msra.mxu1 %v2663_v1  ;;  %2334 = vmatpush3.bf16.msra.mxu0 %v2664_v2  ;;  %v2695_v1 = vld [vmem:[%s3509_s7 + $0x58] sm:$0xff]   ;;  %v2707_v2 = vld [vmem:[%s3510_s8 + $0x10] sm:$0xff]  }
 0x1d3   :  { %2357 = vmatprep.subr.bf16.mxu1 %v2665_v3  ;;  %2335 = vmatprep.subr.bf16.mxu0 %v2666_v4  ;;  %v2696_v3 = vld [vmem:[%s3509_s7 + $0x18] sm:$0xff]   ;;  %v2697_v4 = vld [vmem:[%s3509_s7 + $0x60] sm:$0xff]  }
 0x1d6   :  { %2358 = vmatpush3.bf16.msra.mxu1 %v2667_v5  ;;  %2336 = vmatpush3.bf16.msra.mxu0 %v2668_v6  ;;  %v2708_v5 = vld [vmem:[%s3510_s8 + $0x18] sm:$0xff]   ;;  %v2698_v6 = vld [vmem:[%s3509_s7 + $0x20] sm:$0xff]  }
 0x1d7   :  { %2359 = vmatprep.subr.bf16.mxu1 %v2669_v7  ;;  %2337 = vmatprep.subr.bf16.mxu0 %v2670_v8  ;;  %v2699_v7 = vld [vmem:[%s3509_s7 + $0x68] sm:$0xff]   ;;  %v2709_v8 = vld [vmem:[%s3510_s8 + $0x20] sm:$0xff]  }
 0x1da   :  { %2360 = vmatpush3.bf16.msra.mxu1 %v2671_v9  ;;  %2338 = vmatpush3.bf16.msra.mxu0 %v2672_v10  ;;  %v2700_v9 = vld [vmem:[%s3509_s7 + $0x28] sm:$0xff]   ;;  %v2701_v10 = vld [vmem:[%s3509_s7 + $0x70] sm:$0xff]  }
 0x1db   :  { %2361 = vmatprep.subr.bf16.mxu1 %v2673_v11  ;;  %2339 = vmatprep.subr.bf16.mxu0 %v2674_v12  ;;  %v2710_v11 = vld [vmem:[%s3510_s8 + $0x28] sm:$0xff]   ;;  %v2702_v12 = vld [vmem:[%s3509_s7 + $0x30] sm:$0xff]  }
 0x1de   :  { %2362 = vmatpush3.bf16.msra.mxu1 %v2675_v13  ;;  %2340 = vmatpush3.bf16.msra.mxu0 %v2676_v14  ;;  %v2703_v13 = vld [vmem:[%s3509_s7 + $0x78] sm:$0xff]  }
 0x1df   :  { %2363 = vmatprep.subr.bf16.mxu1 %v2677_v15  ;;  %2341 = vmatprep.subr.bf16.mxu0 %v2678_v16  ;;  %v2704_v14 = vld [vmem:[%s3509_s7 + $0x38] sm:$0xff]   ;;  %v2711_v15 = vld [vmem:[%s3510_s8 + $0x30] sm:$0xff]  }
 0x1e0   :  { %v2712_v16 = vld [vmem:[%s3510_s8 + $0x38] sm:$0xff]  }
 0x1e2   :  { %2364 = vmatpush3.bf16.msra.mxu1 %v2679_v17  ;;  %2342 = vmatpush3.bf16.msra.mxu0 %v2680_v18  ;;  %v2713_v17 = vld [vmem:[%s3509_s7 + $0xc0] sm:$0xff]  }
 0x1e3   :  { %2365 = vmatprep.subr.bf16.mxu1 %v2681_v19  ;;  %2343 = vmatprep.subr.bf16.mxu0 %v2682_v20  ;;  %v2238_v20 = vld [vmem:[%s3512_s6] ss:$0 sm:$0xff] }
 0x1e6   :  { %2366 = vmatpush3.bf16.msra.mxu1 %v2683_v21  ;;  %2344 = vmatpush3.bf16.msra.mxu0 %v2684_v22 }
 0x1e7   :  { %2367 = vmatprep.subr.bf16.mxu1 %v2685_v23  ;;  %2345 = vmatprep.subr.bf16.mxu0 %v2686_v24 }
 0x1ea   :  { %2368 = vmatpush3.bf16.msra.mxu1 %v2687_v25  ;;  %2346 = vmatpush3.bf16.msra.mxu0 %v2688_v26 }
 0x1eb   :  { %2428 = vmatprep.subr.bf16.mxu0 %v2729_v44  ;;  %2384 = vmatprep.subr.bf16.mxu1 %v2689_v27 }
 0x2a0   :  { %v1199_v36 = vpop.f32.mrb[0].mxu0  ;;  %v1281_v37 = vpop.f32.mrb[8].mxu1 }
 0x2a1   :  { %v2448_v38 = vadd.f32 %v1199_v36, %v467_v32  ;;  %v2450_v40 = vadd.f32 %v1281_v37, %v475_v33  ;;  %v1201_v41 = vpop.f32.mrb[1].mxu0  ;;  %v1283_v42 = vpop.f32.mrb[9].mxu1  ;;  %v2716_v36 = vld [vmem:[%s3509_s7 + $0x88] sm:$0xff]   ;;  %v2717_v37 = vld [vmem:[%s3509_s7 + $0xd0] sm:$0xff]  }
 0x2a2   :  { %v2449_v43 = vadd.f32 %v1201_v41, %v471_v34  ;;  %v2451_v45 = vadd.f32 %v1283_v42, %v479_v35  ;;  %v1203_v46 = vpop.f32.mrb[2].mxu0  ;;  %v1285_v49 = vpop.f32.mrb[10].mxu1  ;;  %v2715_v35 = vld [vmem:[%s3509_s7 + $0xc8] sm:$0xff]   ;;  %v2720_v41 = vld [vmem:[%s3509_s7 + $0x98] sm:$0xff]   ;;  %v2721_v42 = vld [vmem:[%s3509_s7 + $0xe0] sm:$0xff]  }
 0x2a3   :  { %vm1288_vm10 = vcmp.gt.f32.partialorder %v2448_v38, 0.0  ;;  %v1292_v29 = vmul.f32 0.01, %v2448_v38  ;;  %vm1290_vm11 = vcmp.gt.f32.partialorder %v2450_v40, 0.0  ;;  %v1294_v47 = vmul.f32 0.01, %v2450_v40 }
 0x2a4   :  { %vm1289_vm12 = vcmp.gt.f32.partialorder %v2449_v43, 0.0  ;;  %v1293_v52 = vmul.f32 0.01, %v2449_v43  ;;  %vm1291_vm13 = vcmp.gt.f32.partialorder %v2451_v45, 0.0  ;;  %v1295_v31 = vmul.f32 0.01, %v2451_v45 }
 0x2a5   :  { %v1296_v48 = vsel %vm1288_vm10, %v2448_v38, %v1292_v29  ;;  %v1298_v39 = vsel %vm1290_vm11, %v2450_v40, %v1294_v47  ;;  %v1204_v53 = vpop.f32.mrb[3].mxu0  ;;  %v1286_v54 = vpop.f32.mrb[11].mxu1  ;;  %v2718_v38 = vld [vmem:[%s3509_s7 + $0x90] sm:$0xff]   ;;  %v2719_v40 = vld [vmem:[%s3509_s7 + $0xd8] sm:$0xff]   ;;  %v2724_v46 = vld [vmem:[%s3509_s7 + $0xa8] sm:$0xff]  }
 0x2a6   :  { %v1297_v55 = vsel %vm1289_vm12, %v2449_v43, %v1293_v52  ;;  %v1299_v56 = vsel %vm1291_vm13, %v2451_v45, %v1295_v31  ;;  %v1300_v60 = vpack.c.bf16 %v1296_v48, %v1296_v48  ;;  %v3364_v61 = vpack.c.bf16 %v1298_v39, %v1298_v39  ;;  %v2722_v43 = vld [vmem:[%s3509_s7 + $0xa0] sm:$0xff]   ;;  %v2723_v45 = vld [vmem:[%s3509_s7 + $0xe8] sm:$0xff]   ;;  %v2725_v49 = vld [vmem:[%s3509_s7 + $0xf0] sm:$0xff]  }
 0x2a7   :  { %v1301_v57 = vpack.c.bf16 %v1297_v55, %v1297_v55  ;;  %v3359_v58 = vpack.c.bf16 %v1299_v56, %v1299_v56  ;;  %v2726_v29 = vld [vmem:[%s3509_s7 + $0xb0] sm:$0xff]   ;;  %v2727_v52 = vld [vmem:[%s3509_s7 + $0xf8] sm:$0xff]  }
 0x2a8   :  { %v2728_v54 = vld [vmem:[%s3509_s7 + $0xb8] sm:$0xff]  }
 0x2a9   :  { %1599 = vmatprep.mubr.bf16.mxu0 %v1301_v57  ;;  %1639 = vmatprep.mubr.bf16.mxu1 %v3359_v58 }
 0x2aa   :  { %1600 = vmatmul.mubr.bf16.vlgmr.msra.gmra.mrb[4].mxu0 %v1300_v60  ;;  %1640 = vmatmul.mubr.bf16.vlgmr.msra.gmra.mrb[12].mxu1 %v3364_v61 }
 0x2ab   :  { %2385 = vmatpush3.bf16.msra.mxu1 %v2690_v30  ;;  %2040 = vmatprep.mubr.bf16.mxu1 %v1301_v57 }
 0x2ac   :  { %2386 = vmatprep.subr.bf16.mxu1 %v2691_v62  ;;  %2429 = vmatpush3.bf16.msra.mxu0 %v2705_v50 }
 0x2ad   :  { %2430 = vmatprep.subr.bf16.mxu0 %v2729_v44  ;;  %2444 = vmatprep.mubr.msk.bf16.mxu0 %vm2732_vm14, %v2729_v44 }
 0x2af   :  { %2387 = vmatpush3.bf16.msra.mxu1 %v2692_v51 }
 0x2b0   :  { %2388 = vmatprep.subr.bf16.mxu1 %v2693_v59  ;;  %2431 = vmatpush3.bf16.msra.mxu0 %v2706_v63  ;;  %v2311_v59 = vld [vmem:[%s3514_s9] ss:$0 sm:$0xff] }
 0x2b1   :  { %2432 = vmatprep.subr.bf16.mxu0 %v2729_v44 }
 0x2b3   :  { %2389 = vmatpush3.bf16.msra.mxu1 %v2694_v0 }
 0x2b4   :  { %2390 = vmatprep.subr.bf16.mxu1 %v2695_v1  ;;  %2433 = vmatpush3.bf16.msra.mxu0 %v2707_v2 }
 0x2b5   :  { %2434 = vmatprep.subr.bf16.mxu0 %v2729_v44 }
 0x2b7   :  { %2391 = vmatpush3.bf16.msra.mxu1 %v2696_v3 }
 0x2b8   :  { %2392 = vmatprep.subr.bf16.mxu1 %v2697_v4  ;;  %2435 = vmatpush3.bf16.msra.mxu0 %v2708_v5 }
 0x2b9   :  { %2436 = vmatprep.subr.bf16.mxu0 %v2729_v44 }
 0x2bb   :  { %2393 = vmatpush3.bf16.msra.mxu1 %v2698_v6 }
 0x2bc   :  { %2394 = vmatprep.subr.bf16.mxu1 %v2699_v7  ;;  %2437 = vmatpush3.bf16.msra.mxu0 %v2709_v8 }
 0x2bd   :  { %2438 = vmatprep.subr.bf16.mxu0 %v2729_v44 }
 0x2bf   :  { %2395 = vmatpush3.bf16.msra.mxu1 %v2700_v9 }
 0x2c0   :  { %2396 = vmatprep.subr.bf16.mxu1 %v2701_v10  ;;  %2439 = vmatpush3.bf16.msra.mxu0 %v2710_v11 }
 0x2c1   :  { %2440 = vmatprep.subr.bf16.mxu0 %v2729_v44 }
 0x2c3   :  { %2397 = vmatpush3.bf16.msra.mxu1 %v2702_v12 }
 0x2c4   :  { %2398 = vmatprep.subr.bf16.mxu1 %v2703_v13  ;;  %2441 = vmatpush3.bf16.msra.mxu0 %v2711_v15 }
 0x2c5   :  { %2442 = vmatprep.subr.bf16.mxu0 %v2729_v44  ;;  %v2714_v44 = vld [vmem:[%s3509_s7 + $0x80] sm:$0xff]  }
 0x2c7   :  { %2399 = vmatpush3.bf16.msra.mxu1 %v2704_v14 }
 0x2c8   :  { %2443 = vmatpush3.bf16.msra.mxu0 %v2712_v16 }
 0x2c9   :  { %2406 = vmatprep.subr.bf16.mxu0 %v2713_v17 }
 0x2ca   :  { %2041 = vmatmul.mubr.bf16.vlgmr.msra.gmra.mrb[16].mxu1 %v1300_v60 }
 0x37d   :  { %v2347_v18 = vpop.f32.mrb[4].mxu0  ;;  %v2369_v19 = vpop.f32.mrb[12].mxu1 }
 0x37e   :  { %v2348_v21 = vpop.f32.mrb[5].mxu0  ;;  %v2370_v22 = vpop.f32.mrb[13].mxu1 }
 0x37f   :  { %v2349_v23 = vadd.f32 %v2348_v21, %v2347_v18  ;;  %v2371_v24 = vadd.f32 %v2370_v22, %v2369_v19  ;;  %v2350_v25 = vpop.f32.mrb[6].mxu0  ;;  %v2372_v26 = vpop.f32.mrb[14].mxu1 }
 0x380   :  { %v2351_v27 = vpop.f32.mrb[7].mxu0  ;;  %v2373_v28 = vpop.f32.mrb[15].mxu1 }
 0x381   :  { %v1602_v32 = vadd.f32 %v2349_v23, %v2238_v20 }
 0x383   :  { %v1642_v33 = vadd.f32 %v2371_v24, %v1602_v32 }
 0x385   :  { %v1711_v34 = vpack.c.bf16 %v1642_v33, %v1642_v33  ;;  %2096 = vst [vmem:[%s3513_s11] sm:$0xff] %v1642_v33 }
 0x387   :  { %2445 = vmatmul.mubr.bf16.vlgmr.msra.gmra.mrb[8].mxu0 %v1711_v34 }
 0x388   :  { %2407 = vmatpush3.bf16.msra.mxu0 %v2714_v44  ;;  %2080 = vmatprep.mubr.bf16.mxu0 %v3359_v58 }
 0x389   :  { %2408 = vmatprep.subr.bf16.mxu0 %v2715_v35 }
 0x38c   :  { %2409 = vmatpush3.bf16.msra.mxu0 %v2716_v36 }
 0x38d   :  { %2410 = vmatprep.subr.bf16.mxu0 %v2717_v37 }
 0x390   :  { %2411 = vmatpush3.bf16.msra.mxu0 %v2718_v38 }
 0x391   :  { %2412 = vmatprep.subr.bf16.mxu0 %v2719_v40 }
 0x394   :  { %2413 = vmatpush3.bf16.msra.mxu0 %v2720_v41 }
 0x395   :  { %2414 = vmatprep.subr.bf16.mxu0 %v2721_v42 }
 0x398   :  { %2415 = vmatpush3.bf16.msra.mxu0 %v2722_v43 }
 0x399   :  { %2416 = vmatprep.subr.bf16.mxu0 %v2723_v45 }
 0x39c   :  { %2417 = vmatpush3.bf16.msra.mxu0 %v2724_v46 }
 0x39d   :  { %v2400_v47 = vpop.f32.mrb[16].mxu1  ;;  %2418 = vmatprep.subr.bf16.mxu0 %v2725_v49 }
 0x39e   :  { %v2401_v31 = vpop.f32.mrb[17].mxu1 }
 0x39f   :  { %v2402_v48 = vadd.f32 %v2401_v31, %v2400_v47  ;;  %v2403_v39 = vpop.f32.mrb[18].mxu1 }
 0x3a0   :  { %v2404_v53 = vpop.f32.mrb[19].mxu1  ;;  %2419 = vmatpush3.bf16.msra.mxu0 %v2726_v29 }
 0x3a1   :  { %2420 = vmatprep.subr.bf16.mxu0 %v2727_v52 }
 0x3a4   :  { %2421 = vmatpush3.bf16.msra.mxu0 %v2728_v54 }
 0x3a7   :  { %2081 = vmatmul.mubr.bf16.vlgmr.msra.gmra.mrb[12].mxu0 %v3364_v61 }
 0x45a   :  { %v1810_v55 = vpop.f32.mrb[8].mxu0 }
 0x45b   :  { %v2043_v56 = vadd.f32 %v2402_v48, %v1810_v55  ;;  %v2446_v57 = vpop.f32.mrb[9].mxu0 }
 0x45c   :  { %v1813_v58 = vpop.f32.mrb[10].mxu0 }
 0x45d   :  { %v2447_v30 = vpop.f32.mrb[11].mxu0 }
 0x47a   :  { %v2422_v60 = vpop.f32.mrb[12].mxu0 }
 0x47b   :  { %v2423_v62 = vpop.f32.mrb[13].mxu0 }
 0x47c   :  { %v2424_v50 = vadd.f32 %v2423_v62, %v2422_v60  ;;  %v2425_v51 = vpop.f32.mrb[14].mxu0 }
 0x47d   :  { %v2426_v63 = vpop.f32.mrb[15].mxu0 }
 0x47e   :  { %v2083_v0 = vadd.f32 %v2424_v50, %v2043_v56 }
 0x480   :  { %v2095_v1 = vadd.f32 %v2311_v59, %v2083_v0 }
 0x482   :  { %2097 = vst [vmem:[%s3515_s10] sm:$0xff] %v2095_v1 }

</bundles_post_ra>
